<compile_context>
chip_gen: v7x
topology: tpu7x:2x2x1
jax: 0.10.0
libtpu: 0.0.40
codegen_flags: <defaults>
</compile_context>

<pallas_src>
import functools
import math

import jax
import jax.numpy as jnp
from jax.experimental import pallas as pl
from jax.experimental.pallas import tpu as pltpu


# --------------------------------------------------------------------------
# Kernel 1: conv_1x1_in  (no residual, no mask -- matches PyTorch)
# --------------------------------------------------------------------------
def _conv_in_kernel(x_ref, w_ref, b_ref, o_ref):
    o_ref[0] = (jnp.dot(x_ref[0], w_ref[...],
                        preferred_element_type=jnp.float32)
                + b_ref[...]).astype(o_ref.dtype)


def conv1x1_in(x, w, b):
    B, T, Cin = x.shape
    Cout = w.shape[1]
    return pl.pallas_call(
        _conv_in_kernel,
        out_shape=jax.ShapeDtypeStruct((B, T, Cout), x.dtype),
        grid=(B,),
        in_specs=[
            pl.BlockSpec((1, T, Cin), lambda b: (b, 0, 0)),
            pl.BlockSpec((Cin, Cout), lambda b: (0, 0)),
            pl.BlockSpec((1, Cout), lambda b: (0, 0)),
        ],
        out_specs=pl.BlockSpec((1, T, Cout), lambda b: (b, 0, 0)),
        compiler_params=pltpu.CompilerParams(dimension_semantics=("parallel",)),
    )(x, w, b)


# --------------------------------------------------------------------------
# Kernel 2: dilated conv1d (k=3, padding=dilation) + ReLU + InstanceNorm1d
# Emits both the raw (residual) and normed activation in one pass
# (conv output never leaves VMEM before being normalized).
# --------------------------------------------------------------------------
def _conv_norm_kernel(xp_ref, w_ref, b_ref, res_ref, nrm_ref, *, d, T):
    xp = xp_ref[0]                      # (T + 2d, C), zero padded
    w = w_ref[...]                      # (3, C, C)
    # Note: the shifted slices for d=1,2,... are sublane-misaligned (cheap VMEM
    # relayout); the whole layer is HBM-bound so this is not the bottleneck.
    h = (jnp.dot(xp[0:T], w[0], preferred_element_type=jnp.float32)
         + jnp.dot(xp[d:d + T], w[1], preferred_element_type=jnp.float32)
         + jnp.dot(xp[2 * d:2 * d + T], w[2], preferred_element_type=jnp.float32)
         + b_ref[...])
    h = jnp.maximum(h, 0.0)             # ReLU
    res_ref[0] = h.astype(res_ref.dtype)
    mu = jnp.mean(h, axis=0, keepdims=True)
    var = jnp.mean(jnp.square(h - mu), axis=0, keepdims=True)   # biased variance
    nrm_ref[0] = ((h - mu) * jax.lax.rsqrt(var + 1e-5)).astype(nrm_ref.dtype)


def dilated_conv_relu_norm(x, w, b, dilation):
    B, T, C = x.shape
    xp = jnp.pad(x, ((0, 0), (dilation, dilation), (0, 0)))   # glue zero padding
    Tp = T + 2 * dilation
    kern = functools.partial(_conv_norm_kernel, d=dilation, T=T)
    return pl.pallas_call(
        kern,
        out_shape=(jax.ShapeDtypeStruct((B, T, C), x.dtype),
                   jax.ShapeDtypeStruct((B, T, C), x.dtype)),
        grid=(B,),
        in_specs=[
            pl.BlockSpec((1, Tp, C), lambda b: (b, 0, 0)),
            pl.BlockSpec((3, C, C), lambda b: (0, 0, 0)),
            pl.BlockSpec((1, C), lambda b: (0, 0)),
        ],
        out_specs=(pl.BlockSpec((1, T, C), lambda b: (b, 0, 0)),
                   pl.BlockSpec((1, T, C), lambda b: (b, 0, 0))),
        compiler_params=pltpu.CompilerParams(dimension_semantics=("parallel",)),
    )(xp, w, b)


# --------------------------------------------------------------------------
# Kernel 3: fused (per batch, per segment):
#   q||k projection -> windowed attention (block-diagonal in segments)
#   -> Wo -> alpha*out + residual -> conv2 -> (x + out) * mask
# --------------------------------------------------------------------------
def _layer_attn_kernel(xn_ref, cr_ref, res_ref, x_ref, mcol_ref, mrow_ref,
                       wqk_ref, bqk_ref, wv_ref, bv_ref, wo_ref, bo_ref,
                       w2_ref, b2_ref, o_ref, *, dk, radius, alpha, scale):
    xn = xn_ref[0]                      # (L, C)  normed features (q, k source)
    cr = cr_ref[0]                      # (L, C)  cross features (v source)
    res = res_ref[0]                    # (L, C)  residual (pre-norm conv1 output)
    x = x_ref[0]                        # (L, C)  layer input
    mcol = mcol_ref[0]                  # (L, 1)  output mask
    mrow = mrow_ref[0, 0]               # (1, L)  key validity mask

    # fused q||k projection (single matmul), v from cross
    qk = jnp.dot(xn, wqk_ref[...], preferred_element_type=jnp.float32) + bqk_ref[...]
    q = qk[:, :dk]
    k = qk[:, dk:]
    v = jnp.dot(cr, wv_ref[...], preferred_element_type=jnp.float32) + bv_ref[...]

    # local (L, L) score tile: attention never leaves the segment.
    scores = jax.lax.dot_general(q, k, (((1,), (1,)), ((), ())),
                                 preferred_element_type=jnp.float32) * scale

    L = scores.shape[0]
    ii = jax.lax.broadcasted_iota(jnp.int32, (L, L), 0)
    jj = jax.lax.broadcasted_iota(jnp.int32, (L, L), 1)
    allowed = (jnp.abs(ii - jj) <= radius) & (mrow > 0.0)

    scores = jnp.where(allowed, scores, jnp.float32(-1e30))
    scores = scores - jnp.max(scores, axis=-1, keepdims=True)
    p = jnp.where(allowed, jnp.exp(scores), 0.0)
    denom = jnp.maximum(jnp.sum(p, axis=-1, keepdims=True), 1e-9)
    p = p * pl.reciprocal(denom, approx=True)

    av = jnp.dot(p, v, preferred_element_type=jnp.float32)          # (L, dk)
    attn = jnp.dot(av, wo_ref[...], preferred_element_type=jnp.float32) + bo_ref[...]

    y = alpha * attn + res
    # TODO(synk): nn.Dropout(ffn_dropout) -> identity (inference semantics).
    z = jnp.dot(y, w2_ref[...], preferred_element_type=jnp.float32) + b2_ref[...]
    o_ref[0] = ((x + z) * mcol).astype(o_ref.dtype)


def decoder_layer(x, cross, mask_col, mask_seg_row, lp, dilation, l_seg, alpha):
    B, T, C = x.shape
    residual, normed = dilated_conv_relu_norm(x, lp["w1"], lp["b1"], dilation)

    dk = lp["wv"].shape[1]
    n_seg = T // l_seg
    radius = dilation // 2                     # window = 2*(dilation//2) + 1
    kern = functools.partial(_layer_attn_kernel, dk=dk, radius=radius,
                             alpha=float(alpha), scale=1.0 / math.sqrt(dk))

    bs_seg = pl.BlockSpec((1, l_seg, C), lambda b, s: (b, s, 0))

    def bs_w(shape):
        return pl.BlockSpec(shape, lambda b, s: tuple(0 for _ in shape))

    return pl.pallas_call(
        kern,
        out_shape=jax.ShapeDtypeStruct((B, T, C), x.dtype),
        grid=(B, n_seg),
        in_specs=[
            bs_seg,                                               # normed (q,k)
            bs_seg,                                               # cross (v)
            bs_seg,                                               # residual
            bs_seg,                                               # layer input x
            pl.BlockSpec((1, l_seg, 1), lambda b, s: (b, s, 0)),  # mask column
            pl.BlockSpec((1, 1, 1, l_seg), lambda b, s: (b, s, 0, 0)),  # key mask
            bs_w(lp["wqk"].shape), bs_w(lp["bqk"].shape),
            bs_w(lp["wv"].shape), bs_w(lp["bv"].shape),
            bs_w(lp["wo"].shape), bs_w(lp["bo"].shape),
            bs_w(lp["w2"].shape), bs_w(lp["b2"].shape),
        ],
        out_specs=bs_seg,
        compiler_params=pltpu.CompilerParams(
            dimension_semantics=("parallel", "parallel")),
    )(normed, cross, residual, x, mask_col, mask_seg_row,
      lp["wqk"], lp["bqk"], lp["wv"], lp["bv"], lp["wo"], lp["bo"],
      lp["w2"], lp["b2"])


# --------------------------------------------------------------------------
# Kernel 4: conv_out * mask, emitted directly in NCT layout (T on lane axis)
# --------------------------------------------------------------------------
def _conv_out_kernel(f_ref, m_ref, wt_ref, b_ref, o_ref):
    out = jnp.dot(wt_ref[...], f_ref[0],
                  preferred_element_type=jnp.float32) + b_ref[...]    # (nc, T)
    o_ref[0] = (out * m_ref[0]).astype(o_ref.dtype)


def conv1x1_out_nct(feature_nct, mask_row, w, b):
    B, C, T = feature_nct.shape
    nc = w.shape[1]
    wt = jnp.transpose(w)               # (nc, C) -- tiny glue transpose
    bt = jnp.reshape(b, (nc, 1))        # (nc, 1)
    return pl.pallas_call(
        _conv_out_kernel,
        out_shape=jax.ShapeDtypeStruct((B, nc, T), feature_nct.dtype),
        grid=(B,),
        in_specs=[
            pl.BlockSpec((1, C, T), lambda b: (b, 0, 0)),
            pl.BlockSpec((1, 1, T), lambda b: (b, 0, 0)),
            pl.BlockSpec((nc, C), lambda b: (0, 0)),
            pl.BlockSpec((nc, 1), lambda b: (0, 0)),
        ],
        out_specs=pl.BlockSpec((1, nc, T), lambda b: (b, 0, 0)),
        compiler_params=pltpu.CompilerParams(dimension_semantics=("parallel",)),
    )(feature_nct, mask_row, wt, bt)


# --------------------------------------------------------------------------
# Decoder forward (glue around the Pallas kernels)
# --------------------------------------------------------------------------
def decoder_forward(x_nct, cross_nct, input_mask, params):
    # x_nct: (B, input_dim, T); cross_nct: (B, d_model, T); input_mask: (B, T)
    x = jnp.transpose(x_nct, (0, 2, 1)).astype(jnp.float32)
    cross = jnp.transpose(cross_nct, (0, 2, 1)).astype(jnp.float32)
    B, T, _ = x.shape
    l_seg = params["l_seg"]
    # TODO(synk): general T would need wrapper padding to a multiple of l_seg.
    assert T % l_seg == 0 and l_seg % 8 == 0, "T must be a multiple of l_seg (>=8)"

    mask = input_mask.astype(jnp.float32)
    mask_col = mask[:, :, None]                              # (B, T, 1)
    mask_seg_row = mask.reshape(B, T // l_seg, 1, l_seg)      # (B, S, 1, l_seg)
    mask_row = mask[:, None, :]                              # (B, 1, T)

    feature = conv1x1_in(x, params["w_in"], params["b_in"])  # conv_1x1_in

    for i, lp in enumerate(params["layers"]):
        feature = decoder_layer(feature, cross, mask_col, mask_seg_row, lp,
                                dilation=2 ** i, l_seg=l_seg,
                                alpha=params["alpha"])

    feature_nct = jnp.transpose(feature, (0, 2, 1))          # needed for return anyway
    out_nct = conv1x1_out_nct(feature_nct, mask_row,
                              params["w_out"], params["b_out"])
    return out_nct, feature_nct


# --------------------------------------------------------------------------
# Deterministic parameter initialization (shapes from the module __init__)
# --------------------------------------------------------------------------
def init_params(key, input_dim, num_classes, num_layers, d_model, l_seg, alpha):
    def dense(k, cin, cout, scale=0.1):
        kw, kb = jax.random.split(k)
        return (jax.random.normal(kw, (cin, cout), jnp.float32) * scale,
                jax.random.normal(kb, (1, cout), jnp.float32) * scale)

    keys = jax.random.split(key, 2 + num_layers)
    params = {"l_seg": l_seg, "alpha": float(alpha)}
    params["w_in"], params["b_in"] = dense(keys[0], input_dim, d_model)
    params["w_out"], params["b_out"] = dense(keys[1], d_model, num_classes)

    d_k = d_model // 2   # LocalAttention hidden dim = d_model // 2, h = 1
    layers = []
    for i in range(num_layers):
        lk = jax.random.split(keys[2 + i], 8)
        w1 = jax.random.normal(lk[0], (3, d_model, d_model), jnp.float32) * 0.1
        b1 = jax.random.normal(lk[1], (1, d_model), jnp.float32) * 0.1
        wq, bq = dense(lk[2], d_model, d_k)
        wk, bk = dense(lk[3], d_model, d_k)
        wv, bv = dense(lk[4], d_model, d_k)
        wo, bo = dense(lk[5], d_k, d_model)
        w2, b2 = dense(lk[6], d_model, d_model)
        layers.append(dict(
            w1=w1, b1=b1,
            wqk=jnp.concatenate([wq, wk], axis=1),   # fused q||k projection weight
            bqk=jnp.concatenate([bq, bk], axis=1),
            wv=wv, bv=bv, wo=wo, bo=bo, w2=w2, b2=b2))
    params["layers"] = layers
    return params


if __name__ == "__main__":
    B, T = 2, 16
    input_dim, num_classes = 8, 6
    num_layers, d_model = 2, 32
    l_seg, n_heads, alpha = 8, 1, 1.0   # n_heads fixed to 1 (as in ASFormer)

    key = jax.random.PRNGKey(0)
    kx, kc, kp = jax.random.split(key, 3)
    x = jax.random.normal(kx, (B, input_dim, T), jnp.float32)      # NCT
    cross = jax.random.normal(kc, (B, d_model, T), jnp.float32)    # NCT
    input_mask = jnp.concatenate(
        [jnp.ones((1, T), jnp.float32),
         jnp.concatenate([jnp.ones((1, T - 4)), jnp.zeros((1, 4))], axis=1)],
        axis=0)                                                    # (B, T)

    params = init_params(kp, input_dim, num_classes, num_layers, d_model,
                         l_seg, alpha)

    out, feature = decoder_forward(x, cross, input_mask, params)
    jax.block_until_ready((out, feature))
    assert out.shape == (B, num_classes, T)
    assert feature.shape == (B, d_model, T)
    assert bool(jnp.all(jnp.isfinite(out))) and bool(jnp.all(jnp.isfinite(feature)))
    print("KERNEL_OK")
</pallas_src>

<mosaic_0001>
module attributes {stable_mosaic.version = 11 : i64} {
  func.func @_conv_in_kernel(%arg0: i32, %arg1: memref<1x16x8xf32, #tpu.memory_space<vmem>>, %arg2: memref<8x32xf32, #tpu.memory_space<vmem>>, %arg3: memref<1x32xf32, #tpu.memory_space<vmem>>, %arg4: memref<1x16x32xf32, #tpu.memory_space<vmem>>) attributes {dimension_semantics = [#tpu.dimension_semantics<parallel>], iteration_bounds = array<i64: 2>, scalar_prefetch = 0 : i64, scratch_operands = 0 : i64, tpu.core_type = #tpu.core_type<tc>, window_params = [{transform_indices = @transform_0, window_bounds = array<i64: 1, 16, 8>}, {pipeline_mode = #tpu.pipeline_mode<synchronous>, transform_indices = @transform_1, window_bounds = array<i64: 8, 32>}, {pipeline_mode = #tpu.pipeline_mode<synchronous>, transform_indices = @transform_2, window_bounds = array<i64: 1, 32>}, {transform_indices = @transform_3, window_bounds = array<i64: 1, 16, 32>}]} {
    %c0 = arith.constant 0 : index
    %c0_0 = arith.constant 0 : index
    %c0_1 = arith.constant 0 : index
    %0 = vector.load %arg1[%c0, %c0_0, %c0_1] : memref<1x16x8xf32, #tpu.memory_space<vmem>>, vector<1x16x8xf32>
    %1 = vector.shape_cast %0 : vector<1x16x8xf32> to vector<16x8xf32>
    %c0_2 = arith.constant 0 : index
    %c0_3 = arith.constant 0 : index
    %2 = vector.load %arg2[%c0_2, %c0_3] : memref<8x32xf32, #tpu.memory_space<vmem>>, vector<8x32xf32>
    %cst = arith.constant dense<0.000000e+00> : vector<16x32xf32>
    %3 = tpu.matmul %1, %2, %cst {dimension_numbers = #tpu.dot_dimension_numbers<[1], [0], [0], [1], [0, 0, 1, 1], [], []>} : vector<16x8xf32>, vector<8x32xf32>, vector<16x32xf32> -> vector<16x32xf32>
    %c0_4 = arith.constant 0 : index
    %c0_5 = arith.constant 0 : index
    %4 = vector.load %arg3[%c0_4, %c0_5] : memref<1x32xf32, #tpu.memory_space<vmem>>, vector<1x32xf32>
    %5 = vector.broadcast %4 : vector<1x32xf32> to vector<16x32xf32>
    %6 = arith.addf %3, %5 : vector<16x32xf32>
    %c0_6 = arith.constant 0 : index
    %c0_7 = arith.constant 0 : index
    %c0_8 = arith.constant 0 : index
    %7 = vector.load %arg4[%c0_6, %c0_7, %c0_8] : memref<1x16x32xf32, #tpu.memory_space<vmem>>, vector<1x16x32xf32>
    %8 = vector.shape_cast %7 : vector<1x16x32xf32> to vector<16x32xf32>
    %9 = vector.shape_cast %6 : vector<16x32xf32> to vector<1x16x32xf32>
    tpu.vector_store %arg4[%c0_6, %c0_7, %c0_8], %9 {strides = array<i32>} : memref<1x16x32xf32, #tpu.memory_space<vmem>>, vector<1x16x32xf32>,
    return
  }
  func.func @transform_0(%arg0: i32) -> (i32, i32, i32) {
    %c0_i32 = arith.constant 0 : i32
    %c0_i32_0 = arith.constant 0 : i32
    %c0_i32_1 = arith.constant 0 : i32
    return %arg0, %c0_i32, %c0_i32_0 : i32, i32, i32
  }
  func.func @transform_1(%arg0: i32) -> (i32, i32) {
    %c0_i32 = arith.constant 0 : i32
    %c0_i32_0 = arith.constant 0 : i32
    %c0_i32_1 = arith.constant 0 : i32
    return %c0_i32, %c0_i32_0 : i32, i32
  }
  func.func @transform_2(%arg0: i32) -> (i32, i32) {
    %c0_i32 = arith.constant 0 : i32
    %c0_i32_0 = arith.constant 0 : i32
    %c0_i32_1 = arith.constant 0 : i32
    return %c0_i32, %c0_i32_0 : i32, i32
  }
  func.func @transform_3(%arg0: i32) -> (i32, i32, i32) {
    %c0_i32 = arith.constant 0 : i32
    %c0_i32_0 = arith.constant 0 : i32
    %c0_i32_1 = arith.constant 0 : i32
    return %arg0, %c0_i32, %c0_i32_0 : i32, i32, i32
  }
}

</mosaic_0001>

<bundles_post_ra>
// kernel: tpu_custom_call.1
= control target key start
LH: loop header
LB: loop body
LE: loop exit
PB: predicated region body
PF: predicated region fallthrough
CT: control target
= control target key end

     0   :  { %8 = vsyncpa [#allocation3], 0  ;;  %s602_s0 = inlined_call_operand.vmem [shape: f32[2,16,8], index: 0, kind: input, shape index: {}]   ;;  %s603_s1 = inlined_call_operand.vmem [shape: f32[8,32], index: 1, kind: input, shape index: {}]   ;;  %s604_s2 = inlined_call_operand.vmem [shape: f32[1,32], index: 2, kind: input, shape index: {}]   ;;  %s605_s3 = inlined_call_operand.hbm [shape: f32[2,16,32], index: 3, kind: output, shape index: {}]  }
   0x1   :  { %10 = vsyncpa [#allocation3 + $0x1], 0  ;;  %s493_s12 = smov 0   ;;  %s495_s13 = smov 0  }
   0x2   :  { %s497_s14 = smov 0   ;;  %s499_s15 = smov 0  }
   0x3 LB: > { %s514_s16 = sadd.s32 4294967295, %s468_s15   ;;  %s340_s17 = sadd.s32 4294967294, %s468_s15   ;;  %s468_s15 = sphi %s499_s15, %s611_s15   ;;  %s464_s14 = sphi %s497_s14, %s610_s14   ;;  %s460_s13 = sphi %s495_s13, %s609_s13   ;;  %s456_s12 = sphi %s493_s12, %s608_s12  }
   0x4   : > { %s518_s18 = sadd.s32 1, %s468_s15   ;;  %s91_s19 = sadd.s32 1, %s464_s14 }
   0x5   : > { %s88_s20 = ssub.s32 %s468_s15, %s518_s18  ;;  %p101_p0 = scmp.ne.s32.totalorder %s464_s14, %s460_s13 }
   0x6   : > { %p89_p1 = scmp.eq.s32.totalorder %s88_s20, 0  ;;  %p102_p2 = scmp.eq.s32.totalorder %s514_s16, 1 }
   0x7   : > { %p107_p3 = scmp.ne.s32.totalorder %s460_s13, %s456_s12  ;;  %p108_p4 = scmp.eq.s32.totalorder %s340_s17, 1 }
   0x8   : > { %s529_s21 = scalar_select %p89_p1, %s464_s14, %s91_s19  }
   0x9   : > { %p531_p5 = por %p102_p2, %p101_p0  ;;  %p535_p6 = por %p108_p4, %p107_p3 }
   0xa   : > { %p343_p7 = scmp.ge.s32.totalorder %s468_s15, 1  ;;  %p140_p8 = scmp.lt.s32.totalorder %s468_s15, 3 }
   0xc   : > { %p141_p9 = pnand %p343_p7, %p140_p8 }
   0xd   : > { %v171_v0 = vld [vmem:[%s603_s1] sm:$0xff] (!%p141_p9)  ;;  %p164_p10 = scmp.lt.s32.totalorder (!%p141_p9), %s514_s16, 1  ;;  %vm179_vm0 = vcmask (!%p141_p9), 64512   ;;  %s161_s4 = sand.u32 (!%p141_p9), 1, %s460_s13   ;;  %vm261_vm1 = vcmask (!%p141_p9), 261120  }
   0xe   : > { %144 = sbr.rel (%p141_p9) target bundleno = 257 (0x101), region = 32  ;;  %360 = vmatprep.subr.mxu0 (!%p141_p9), %v171_v0  ;;  %s344_s5 = sshll.u32 (!%p141_p9), %s161_s4, 4  ;;  %v347_v3 = vld [vmem:[%s604_s2] ss:$0 sm:$0xff] (!%p141_p9) }
   0xf   : > { %361 = vmatpush3.msra.mxu0 (!%p141_p9), %v171_v0  ;;  %s163_s8 = scalar_lea.vmem (!%p141_p9), [#allocation2], %s344_s5  ;;  %s356_s10 = sshll.u32 (!%p141_p9), %s514_s16, 8 }
  0x10   : > { %s278_s9 = sshll.u32 (!%p141_p9), %s163_s8, 4  ;;  %s559_s19 = scalar_lea.hbm (!%p141_p9), %s605_s3, %s356_s10  ;;  %s554_s9 = int_to_ptr.vmem [resolvable:$true] %s278_s9 }
  0x11   : > { %s561_s20 = scalar_lea.sflag (!%p141_p9), [#allocation3], %s161_s4  ;;  %s470_s24 = smov (!%p141_p9), [#allocation2]  }
  0x12   : > { %s410_s25 = sshll.u32 (!%p141_p9), %s470_s24, 4  ;;  %s411_s25 = int_to_ptr.vmem [resolvable:$false] %s410_s25 }
  0x13   : > { %p413_p0 = scmp.lt.s32.totalorder (!%p141_p9), %s554_s9, %s411_s25 }
  0x15   : > { %s165_s26 = scalar_select %p164_p10, %s514_s16, 1 }
  0x16   : > { %s406_s16 = scalar_lea.vmem %s554_s9, 256 }
  0x17   : > { %s355_s27 = sshll.u32 %s165_s26, 4  ;;  %p407_p11 = scmp.ne.s32.totalorder %s554_s9, %s406_s16 }
  0x18   : > { %s168_s30 = scalar_lea.vmem %s602_s0, %s355_s27  ;;  %s412_s26 = scalar_lea.vmem %s411_s25, 512 }
  0x19   : > { %v169_v1 = vld [vmem:[%s168_s30] sm:$0xff]  ;;  %v170_v2 = vld [vmem:[%s168_s30 + $0x8] sm:$0xff]  ;;  %p408_p12 = pnand %p407_p11, %p531_p5  ;;  %p414_p1 = scmp.lt.s32.totalorder %s412_s26, %s406_s16 }
  0x1a   : > { %362 = vmatprep.mubr.msk.f32.mxu0 %vm179_vm0, %v169_v1 }
  0x1b   : > { %363 = vmatmul.mubr.msk.f32.vlgmr.msra.gmra.mrb[0].mxu0 %vm179_vm0, %v170_v2  ;;  %p409_p13 = pneg %p408_p12  ;;  %p415_p2 = por %p414_p1, %p413_p0 }
  0x1d   : > { %p416_p3 = pnand %p415_p2, %p409_p13 }
  0xee   : > { %v364_v4 = vpop.f32.mrb[0].mxu0 }
  0xef   : > { %v258_v5 = vadd.f32 %v364_v4, %v347_v3  ;;  %v252_v6 = vpop.f32.mrb[1].mxu0 }
  0xf0   : > { %v253_v7 = vadd.f32 %v347_v3, %v252_v6 }
  0xf1   : > { %263 = vst.msk [vmem:[%s163_s8 + $0x8] sm:$0xff] %vm261_vm1, %v258_v5 }
  0xf2   : > { %262 = vst.msk [vmem:[%s163_s8] sm:$0xff] %vm261_vm1, %v253_v7 }
  0xf3   : > { %419 = shalt.err (!%p416_p3)
}
  0xf4   : > { %s420_s27 = scalar_lea.hbm %s559_s19, 256  ;;  %s424_s30 = scalar_lea.hbm %s605_s3, 512 }
  0xf5   : > { %p421_p4 = scmp.ne.s32.totalorder %s559_s19, %s420_s27  ;;  %p425_p9 = scmp.lt.u32.totalorder %s559_s19, %s605_s3 }
  0xf6   : > { %p426_p10 = scmp.lt.u32.totalorder %s424_s30, %s420_s27  ;;  %p428_p12 = scmp.lt.u32.totalorder %s420_s27, %s559_s19 }
  0xf7   : > { %p422_p7 = pnand %p421_p4, %p531_p5 }
  0xf8   : > { %p427_p11 = por %p426_p10, %p425_p9 }
  0xf9   : > { %p423_p8 = pneg %p422_p7 }
  0xfa   : > { %p429_p13 = por %p428_p12, %p427_p11 }
  0xfc   : > { %p430_p0 = pnand %p429_p13, %p423_p8 }
  0xfe   : > { %433 = shalt.err (!%p430_p0)
}
  0xff   : > { %s471_s6 = smov 128   ;;  %s472_s7 = smov 8  }
 0x100   : > { %365 = dma.vmem_to_hbm [thread:$0]  (%p531_p5), %s554_s9, 256, %s559_s19, %s561_s20, %s471_s6, %s471_s6, %s472_s7  }
 0x101 PF: > { %p371_p1 = scmp.ge.s32.totalorder %s468_s15, 2  ;;  %s293_s8 = sand.u32 1, %s456_s12  }
 0x102   : > { %s294_s10 = scalar_lea.sflag [#allocation3], %s293_s8 }
 0x103   : > { %p368_p2 = pnand %p371_p1, %p535_p6 }
 0x105   : > { %451 = dma.done.wait (!%p368_p2), %s294_s10, 256  }
 0x106   : > { %453 = vsyncadd (!%p368_p2), %s294_s10, 4294967040  ;;  %p13_p3 = scmp.ge.s32.totalorder %s518_s18, 4   ;;  %s608_s12 = smov %s460_s13 }
 0x107   : > { %s609_s13 = smov %s464_s14  ;;  %s610_s14 = smov %s529_s21 }
 0x108   : > { %s611_s15 = smov %s518_s18  ;;  %15 = sbr.rel (!%p13_p3) target bundleno = 3 (0x3), region = 67 }
 0x10f   :  { %299 = vsyncpa [#allocation3], 1 }
 0x110   :  { %301 = vsyncpa [#allocation3 + $0x1], 1 }

</bundles_post_ra>
